<compile_context>
chip_gen: v5e
topology: v5e:2x2
jax: 0.10.0
libtpu: 0.0.40
codegen_flags: <defaults>
</compile_context>

<pallas_src>
import jax
import jax.numpy as jnp
from jax.experimental import pallas as pl
from jax.experimental.pallas import tpu as pltpu

LANE = 128                       # lane / MXU alignment for K and E dims
SUBLANE = 8                      # sublane alignment for the row dim
TM_MAX = 512                     # max patch rows per grid step
VMEM_BUDGET = 24 * 1024 * 1024   # keep blocks well inside a 32 MiB scoped limit


def _round_up(x: int, m: int) -> int:
    return (x + m - 1) // m * m


def _cdiv(a: int, b: int) -> int:
    return -(-a // b)


def _pick_row_block(N: int, K_pad: int, E_pad: int) -> int:
    """Rows per grid step: sublane-aligned, <= TM_MAX, VMEM-budgeted."""
    # Bytes/row in VMEM: double-buffered x (bf16) + bias (f32) + out (f32).
    per_row = 2 * (K_pad * 2 + E_pad * 4 + E_pad * 4)
    w_bytes = 2 * (K_pad * E_pad * 2)          # resident bf16 weight (worst case 2 bufs)
    cap = (VMEM_BUDGET - w_bytes) // per_row
    tm_max = max(SUBLANE, min(TM_MAX, (cap // SUBLANE) * SUBLANE))
    n_blocks = _cdiv(N, tm_max)
    return _round_up(_cdiv(N, n_blocks), SUBLANE)


def patch_embed_kernel(x_ref, w_ref, pb_ref, o_ref):
    # x_ref:  (1, TM, K_pad)  bf16  flattened-patch rows for one (row-block, batch)
    # w_ref:  (K_pad, E_pad)  bf16  projection weight, VMEM-resident for whole grid
    # pb_ref: (TM, E_pad)     f32   pos_embed + conv_bias rows (batch-invariant)
    # o_ref:  (1, TM, E_pad)  f32   output tile
    o_ref[0] = (
        jnp.dot(x_ref[0], w_ref[...], preferred_element_type=jnp.float32)
        + pb_ref[...]
    ).astype(o_ref.dtype)


def patch_embedding_forward(x, conv_weight, conv_bias, pos_embed, patch_size):
    """
    x:           (B, C, H, W)  float32, NCHW like PyTorch
    conv_weight: (E, C, P, P)  like nn.Conv2d weight
    conv_bias:   (E,)
    pos_embed:   (1, max_patches, E)
    Returns:     (B, N, E) float32 with N = (H//P)*(W//P)
    """
    B, C, H, W = x.shape
    E = conv_weight.shape[0]
    P = patch_size
    assert H % P == 0 and W % P == 0, (
        f"H={H}, W={W} must be multiples of patch_size={P} "
        "(nn.Conv2d with stride=P would silently truncate the remainder)")
    Hp, Wp = H // P, W // P
    N = Hp * Wp
    K = C * P * P

    # --- patchify: layout-only reshape/transpose, no compute ---
    # (B, C, Hp, P, Wp, P) -> (B, Hp, Wp, C, P, P) -> (B, N, K)
    xp = x.reshape(B, C, Hp, P, Wp, P)
    xp = jnp.transpose(xp, (0, 2, 4, 1, 3, 5)).reshape(B, N, K)

    # conv weight (E, C, P, P) -> matmul weight (K, E)
    w_mat = conv_weight.reshape(E, K).T

    # Fold conv bias into the positional embedding. Mirror the module: pos_embed
    # is only added when num_patches fits; the conv bias is always added.
    if N <= pos_embed.shape[1]:
        pos = pos_embed[0, :N, :].astype(jnp.float32)
    else:
        pos = jnp.zeros((N, E), jnp.float32)
    pos_bias = pos + conv_bias[None, :].astype(jnp.float32)            # (N, E)

    # Pad K/E up to lane multiples (zeros contribute nothing to the matmul);
    # pad N up to a multiple of the chosen row block.
    K_pad = _round_up(K, LANE)
    E_pad = _round_up(E, LANE)
    TM = _pick_row_block(N, K_pad, E_pad)
    n_blocks = _cdiv(N, TM)
    N_pad = TM * n_blocks

    # bf16 inputs to the MXU, f32 accumulate. (Deliberate precision deviation
    # from the f32 PyTorch conv; checked against a bf16-quantized reference.)
    xp = jnp.pad(xp, ((0, 0), (0, N_pad - N), (0, K_pad - K))).astype(jnp.bfloat16)
    w_mat = jnp.pad(w_mat, ((0, K_pad - K), (0, E_pad - E))).astype(jnp.bfloat16)
    pos_bias = jnp.pad(pos_bias, ((0, N_pad - N), (0, E_pad - E)))

    # Batch is the innermost grid axis so the pos_bias row-block index is
    # unchanged across it (no re-fetch) and the weight block index is constant
    # across the whole grid (fetched once).
    grid = (n_blocks, B)

    out = pl.pallas_call(
        patch_embed_kernel,
        out_shape=jax.ShapeDtypeStruct((B, N_pad, E_pad), jnp.float32),
        grid=grid,
        in_specs=[
            pl.BlockSpec((1, TM, K_pad), lambda n, b: (b, n, 0)),   # patch rows
            pl.BlockSpec((K_pad, E_pad), lambda n, b: (0, 0)),      # weight (resident)
            pl.BlockSpec((TM, E_pad), lambda n, b: (n, 0)),         # pos+bias (batch-invariant)
        ],
        out_specs=pl.BlockSpec((1, TM, E_pad), lambda n, b: (b, n, 0)),
        compiler_params=pltpu.CompilerParams(
            dimension_semantics=("parallel", "parallel"),
            vmem_limit_bytes=32 * 1024 * 1024,
        ),
    )(xp, w_mat, pos_bias)

    return out[:, :N, :E]


def reference_forward(x, conv_weight, conv_bias, pos_embed, patch_size,
                      quantize_bf16=False):
    """Pure-JAX reference mirroring the PyTorch module.

    With quantize_bf16=True, x and the weight are rounded to bf16 first so the
    reference matches the kernel's bf16-input / f32-accumulate math.
    """
    B, C, H, W = x.shape
    E = conv_weight.shape[0]
    P = patch_size
    Hp, Wp = H // P, W // P
    N = Hp * Wp
    K = C * P * P
    xp = x.reshape(B, C, Hp, P, Wp, P)
    xp = jnp.transpose(xp, (0, 2, 4, 1, 3, 5)).reshape(B, N, K)
    w_mat = conv_weight.reshape(E, K).T
    if quantize_bf16:
        xp = xp.astype(jnp.bfloat16).astype(jnp.float32)
        w_mat = w_mat.astype(jnp.bfloat16).astype(jnp.float32)
    out = jnp.einsum("bnk,ke->bne", xp, w_mat,
                     preferred_element_type=jnp.float32)
    out = out + conv_bias[None, None, :]
    if N <= pos_embed.shape[1]:
        out = out + pos_embed[:, :N, :]
    return out


if __name__ == "__main__":
    # Small shapes consistent with the module: batch=2, channels=4, H=W=16,
    # patch=4, embed=32, max_patches=8*8.
    B, C, H, W = 2, 4, 16, 16
    patch_size = 4
    embed_dim = 32
    max_patches = 8 * 8

    key = jax.random.PRNGKey(0)
    k_x, k_w, k_b, k_pos = jax.random.split(key, 4)

    x = jax.random.normal(k_x, (B, C, H, W), dtype=jnp.float32)
    conv_weight = jax.random.normal(
        k_w, (embed_dim, C, patch_size, patch_size), dtype=jnp.float32) * 0.1
    conv_bias = jax.random.normal(k_b, (embed_dim,), dtype=jnp.float32) * 0.1
    pos_embed = jax.random.normal(
        k_pos, (1, max_patches, embed_dim), dtype=jnp.float32) * 0.02

    out = patch_embedding_forward(x, conv_weight, conv_bias, pos_embed, patch_size)
    out = jax.block_until_ready(out)

    N = (H // patch_size) * (W // patch_size)
    assert out.shape == (B, N, embed_dim)

    # Tight check vs a reference using the same bf16-quantized inputs
    # (isolates kernel correctness from bf16 rounding of the inputs).
    ref_q = reference_forward(x, conv_weight, conv_bias, pos_embed, patch_size,
                              quantize_bf16=True)
    assert jnp.allclose(out, ref_q, atol=2e-3, rtol=2e-3), \
        "mismatch vs bf16-quantized JAX reference"

    # Loose check vs the full-f32 module semantics (bf16 input rounding only).
    ref_f32 = reference_forward(x, conv_weight, conv_bias, pos_embed, patch_size)
    assert jnp.allclose(out, ref_f32, atol=1e-1), \
        "mismatch vs f32 module reference"

    print("KERNEL_OK")
</pallas_src>

<mosaic_0001>
module attributes {stable_mosaic.version = 11 : i64} {
  func.func @patch_embed_kernel(%arg0: i32, %arg1: i32, %arg2: memref<1x16x128xbf16, #tpu.memory_space<vmem>>, %arg3: memref<128x128xbf16, #tpu.memory_space<vmem>>, %arg4: memref<16x128xf32, #tpu.memory_space<vmem>>, %arg5: memref<1x16x128xf32, #tpu.memory_space<vmem>>) attributes {dimension_semantics = [#tpu.dimension_semantics<parallel>, #tpu.dimension_semantics<parallel>], iteration_bounds = array<i64: 1, 2>, scalar_prefetch = 0 : i64, scratch_operands = 0 : i64, tpu.core_type = #tpu.core_type<tc>, window_params = [{transform_indices = @transform_0, window_bounds = array<i64: 1, 16, 128>}, {pipeline_mode = #tpu.pipeline_mode<synchronous>, transform_indices = @transform_1, window_bounds = array<i64: 128, 128>}, {transform_indices = @transform_2, window_bounds = array<i64: 16, 128>}, {transform_indices = @transform_3, window_bounds = array<i64: 1, 16, 128>}]} {
    %c0 = arith.constant 0 : index
    %c0_0 = arith.constant 0 : index
    %c0_1 = arith.constant 0 : index
    %0 = vector.load %arg2[%c0, %c0_0, %c0_1] : memref<1x16x128xbf16, #tpu.memory_space<vmem>>, vector<1x16x128xbf16>
    %1 = vector.shape_cast %0 : vector<1x16x128xbf16> to vector<16x128xbf16>
    %c0_2 = arith.constant 0 : index
    %c0_3 = arith.constant 0 : index
    %2 = vector.load %arg3[%c0_2, %c0_3] : memref<128x128xbf16, #tpu.memory_space<vmem>>, vector<128x128xbf16>
    %cst = arith.constant dense<0.000000e+00> : vector<16x128xf32>
    %3 = tpu.matmul %1, %2, %cst {dimension_numbers = #tpu.dot_dimension_numbers<[1], [0], [0], [1], [0, 0, 1, 1], [], []>} : vector<16x128xbf16>, vector<128x128xbf16>, vector<16x128xf32> -> vector<16x128xf32>
    %c0_4 = arith.constant 0 : index
    %c0_5 = arith.constant 0 : index
    %4 = vector.load %arg4[%c0_4, %c0_5] : memref<16x128xf32, #tpu.memory_space<vmem>>, vector<16x128xf32>
    %5 = arith.addf %3, %4 : vector<16x128xf32>
    %c0_6 = arith.constant 0 : index
    %c0_7 = arith.constant 0 : index
    %c0_8 = arith.constant 0 : index
    %6 = vector.load %arg5[%c0_6, %c0_7, %c0_8] : memref<1x16x128xf32, #tpu.memory_space<vmem>>, vector<1x16x128xf32>
    %7 = vector.shape_cast %6 : vector<1x16x128xf32> to vector<16x128xf32>
    %8 = vector.shape_cast %5 : vector<16x128xf32> to vector<1x16x128xf32>
    tpu.vector_store %arg5[%c0_6, %c0_7, %c0_8], %8 {strides = array<i32>} : memref<1x16x128xf32, #tpu.memory_space<vmem>>, vector<1x16x128xf32>,
    return
  }
  func.func @transform_0(%arg0: i32, %arg1: i32) -> (i32, i32, i32) {
    %c0_i32 = arith.constant 0 : i32
    %c0_i32_0 = arith.constant 0 : i32
    return %arg1, %arg0, %c0_i32 : i32, i32, i32
  }
  func.func @transform_1(%arg0: i32, %arg1: i32) -> (i32, i32) {
    %c0_i32 = arith.constant 0 : i32
    %c0_i32_0 = arith.constant 0 : i32
    %c0_i32_1 = arith.constant 0 : i32
    return %c0_i32, %c0_i32_0 : i32, i32
  }
  func.func @transform_2(%arg0: i32, %arg1: i32) -> (i32, i32) {
    %c0_i32 = arith.constant 0 : i32
    %c0_i32_0 = arith.constant 0 : i32
    return %arg0, %c0_i32 : i32, i32
  }
  func.func @transform_3(%arg0: i32, %arg1: i32) -> (i32, i32, i32) {
    %c0_i32 = arith.constant 0 : i32
    %c0_i32_0 = arith.constant 0 : i32
    return %arg1, %arg0, %c0_i32 : i32, i32, i32
  }
}

</mosaic_0001>

<bundles_post_ra>
// kernel: tpu_custom_call.1
= control target key start
LH: loop header
LB: loop body
LE: loop exit
PB: predicated region body
PF: predicated region fallthrough
CT: control target
= control target key end

     0   :  { %8 = vsyncpa [#allocation3], 0  ;;  %s983_s0 = inlined_call_operand.hbm [shape: bf16[2,16,128], index: 0, kind: input, shape index: {}]   ;;  %s984_s1 = inlined_call_operand.hbm [shape: bf16[128,128], index: 1, kind: input, shape index: {}]   ;;  %s985_s2 = inlined_call_operand.hbm [shape: f32[16,128], index: 2, kind: input, shape index: {}]   ;;  %s986_s3 = inlined_call_operand.hbm [shape: f32[2,16,128], index: 3, kind: output, shape index: {}]  }
   0x1   :  { %10 = vsyncpa [#allocation3 + $0x1], 0 }
   0x2   :  { %11 = vsyncpa [#allocation6], 0 }
   0x3   :  { %12 = vsyncpa [#allocation4], 0 }
   0x4   :  { %14 = vsyncpa [#allocation4 + $0x1], 0  ;;  %s830_s12 = smov 0   ;;  %s832_s13 = smov 0  }
   0x5   :  { %s834_s14 = smov 0   ;;  %s836_s15 = smov 0  }
   0x6   :  { %s838_s16 = smov 0   ;;  %s840_s17 = smov 0  }
   0x7 LB: > { %s469_s18 = sadd.s32 4294967295, %s800_s17   ;;  %s470_s19 = sadd.s32 4294967294, %s800_s17   ;;  %s800_s17 = sphi %s840_s17, %s20_s17   ;;  %s796_s16 = sphi %s838_s16, %s996_s16   ;;  %s792_s15 = sphi %s836_s15, %s995_s15   ;;  %s788_s14 = sphi %s834_s14, %s994_s14   ;;  %s784_s13 = sphi %s832_s13, %s993_s13   ;;  %s780_s12 = sphi %s830_s12, %s992_s12  }
   0x8   : > { %p54_p0 = scmp.ne.s32.totalorder %s784_s13, %s780_s12  ;;  %p866_p1 = scmp.eq.s32.totalorder %s469_s18, 0 }
   0x9   : > { %p133_p2 = scmp.eq.s32.totalorder %s470_s19, 1  ;;  %p471_p4 = scmp.ge.s32.totalorder %s800_s17, 1 }
   0xa   : > { %p872_p3 = por %p866_p1, %p54_p0  ;;  %p140_p6 = scmp.lt.s32.totalorder %s800_s17, 3 }
   0xb   : > { %p877_p5 = por %p133_p2, %p54_p0  ;;  %s151_s25 = sshll.u32 %s984_s1, 4  ;;  %s152_s25 = int_to_ptr.hbm [resolvable:$true] %s151_s25 }
   0xc   : > { %p885_p7 = pnand %p471_p4, %p140_p6  ;;  %s802_s27 = smov [#allocation5]  }
   0xd   : > { %s153_s28 = sshll.u32 %s802_s27, 4  ;;  %p474_p10 = scmp.ge.s32.totalorder %s800_s17, 2  ;;  %s154_s28 = int_to_ptr.vmem [resolvable:$true] %s153_s28 }
   0xe   : > { %p547_p8 = pneg %p885_p7  ;;  %s168_s4 = sshll.u32 %s985_s2, 4  ;;  %s169_s4 = int_to_ptr.hbm [resolvable:$true] %s168_s4 }
   0xf   : > { %s803_s5 = smov 64   ;;  %s804_s6 = smov 4  }
  0x10   : > { %p548_p9 = pnand %p547_p8, %p866_p1  ;;  %s805_s7 = smov [#allocation7]  }
  0x11   : > { %s170_s8 = sshll.u32 %s805_s7, 4  ;;  %s806_s9 = smov 128   ;;  %s171_s8 = int_to_ptr.vmem [resolvable:$true] %s170_s8 }
  0x12   : > { %550 = dma.hbm_to_vmem [thread:$0]  (!%p548_p9), %s152_s25, 1024, %s154_s28, [#allocation6], %s803_s5, %s803_s5, %s804_s6  }
  0x13   : > { %s807_s10 = smov 8   ;;  %p127_p11 = scmp.eq.s32.totalorder %s469_s18, 1 }
  0x14   : > { %553 = dma.hbm_to_vmem [thread:$0]  (!%p548_p9), %s169_s4, 256, %s171_s8, [#allocation6], %s806_s9, %s806_s9, %s807_s10  }
  0x15   : > { %s29_s11 = sadd.s32 1, %s796_s16  ;;  %s41_s19 = sadd.s32 1, %s788_s14 }
  0x16   : > { %p30_p12 = scmp.ge.s32.totalorder %s29_s11, 2  ;;  %p48_p13 = scmp.ne.s32.totalorder %s788_s14, %s784_s13 }
  0x17   : > { %p49_p0 = scmp.eq.s32.totalorder %s800_s17, 0  ;;  %p564_p4 = scmp.lt.s32.totalorder %s800_s17, 2 }
  0x18   : > { %s998_s11 = smov (%p30_p12, %s29_s11), 0  ;;  %p909_p2 = por %p127_p11, %p48_p13 }
  0x19   : > { %s36_s24 = ssub.s32 %s796_s16, %s998_s11  ;;  %s184_s25 = sand.u32 1, %s788_s14  }
  0x1a   : > { %p39_p6 = scmp.eq.s32.totalorder %s36_s24, 0  ;;  %p50_p8 = por %p49_p0, %p48_p13 }
  0x1b   : > { %s475_s27 = sshll.u32 %s184_s25, 3  ;;  %s524_s18 = sshll.u32 %s796_s16, 3 }
  0x1c   : > { %s919_s28 = scalar_select %p39_p6, %s788_s14, %s41_s19  }
  0x1d   : > { %s195_s4 = scalar_lea.hbm %s983_s0, %s524_s18  ;;  %s188_s8 = scalar_lea.vmem [#allocation2], %s475_s27 }
  0x1e   : > { %s196_s7 = sshll.u32 %s195_s4, 4  ;;  %s198_s9 = sshll.u32 %s188_s8, 4  ;;  %s197_s7 = int_to_ptr.hbm [resolvable:$true] %s196_s7  ;;  %s199_s9 = int_to_ptr.vmem [resolvable:$true] %s198_s9 }
  0x1f   : > { %p555_p9 = pnand %p564_p4, %p50_p8  ;;  %s185_s10 = scalar_lea.sflag [#allocation3], %s184_s25 }
  0x20   : > { %210 = sbr.rel (%p885_p7) target bundleno = 212 (0xd4), region = 32  ;;  %s932_s19 = sand.u32 (!%p885_p7), 1, %s784_s13  }
  0x21   : > { %557 = dma.hbm_to_vmem [thread:$0]  (!%p555_p9), %s197_s7, 128, %s199_s9, %s185_s10, %s803_s5, %s803_s5, %s804_s6  }
  0x22   : > { %s479_s24 = sshll.u32 (!%p885_p7), %s932_s19, 3  ;;  %s213_s27 = scalar_lea.sflag (!%p885_p7), [#allocation3], %s932_s19 }
  0x23   : > { %s216_s18 = scalar_lea.vmem (!%p885_p7), [#allocation2], %s479_s24 }
  0x25   : > { %767 = dma.done.wait (%p872_p3), %s213_s27, 128  }
  0x26   : > { %769 = vsyncadd (%p872_p3), %s213_s27, 4294967168 }
  0x27   : > { %771 = dma.done.wait (%p866_p1), [#allocation6], 1280  }
  0x28   : > { %773 = vsyncadd (%p866_p1), [#allocation6], 4294966016  ;;  %v533_v0 = vld [vmem:[#allocation5 + $0x38] sm:$0xff]  ;;  %v532_v1 = vld [vmem:[#allocation5 + $0x30] sm:$0xff]  ;;  %s482_s20 = sshll.u32 %s932_s19, 4  ;;  %s534_s21 = sshll.u32 %s792_s15, 4 }
  0x29   : > { %327 = vmatpush.bf16.msra.mxu0 %v533_v0  ;;  %v531_v2 = vld [vmem:[#allocation5 + $0x28] sm:$0xff]  ;;  %v530_v3 = vld [vmem:[#allocation5 + $0x20] sm:$0xff]  ;;  %v529_v4 = vld [vmem:[#allocation5 + $0x18] sm:$0xff]  ;;  %s357_s6 = scalar_lea.hbm %s986_s3, %s534_s21  ;;  %s249_s25 = scalar_lea.vmem [#allocation8], %s482_s20 }
  0x2a   : > { %v528_v5 = vld [vmem:[#allocation5 + $0x10] sm:$0xff]  ;;  %v527_v6 = vld [vmem:[#allocation5 + $0x8] sm:$0xff]  ;;  %v526_v7 = vld [vmem:[#allocation5] sm:$0xff]  ;;  %s358_s29 = sshll.u32 %s249_s25, 4  ;;  %s360_s30 = sshll.u32 %s357_s6, 4  ;;  %s359_s29 = int_to_ptr.vmem [resolvable:$true] %s358_s29  ;;  %s361_s30 = int_to_ptr.hbm [resolvable:$true] %s360_s30 }
  0x2b   : > { %v525_v8 = vld [vmem:[%s216_s18] sm:$0xff]  ;;  %v271_v9 = vld [vmem:[#allocation7] sm:$0xff]  ;;  %v272_v12 = vld [vmem:[#allocation7 + $0x8] sm:$0xff]  ;;  %s344_s4 = scalar_lea.sflag [#allocation4], %s932_s19  ;;  %s728_s7 = sshra.s32 %s361_s30, 4  ;;  %s729_s7 = int_to_ptr.hbm [resolvable:$true] %s728_s7 }
  0x2c   : > { %s730_s15 = scalar_lea.hbm %s729_s7, 16  ;;  %s734_s10 = scalar_lea.hbm %s986_s3, 32 }
  0x2d   : > { %328 = vmatpush.bf16.msra.mxu0 %v532_v1  ;;  %p731_p1 = scmp.ne.s32.totalorder %s729_s7, %s730_s15  ;;  %p735_p11 = scmp.lt.s32.totalorder %s729_s7, %s986_s3 }
  0x2e   : > { %p736_p12 = scmp.lt.s32.totalorder %s734_s10, %s730_s15 }
  0x2f   : > { %p732_p3 = pnand %p731_p1, %p909_p2 }
  0x30   : > { %p737_p13 = por %p736_p12, %p735_p11 }
  0x31   : > { %329 = vmatpush.bf16.msra.mxu0 %v531_v2  ;;  %p733_p7 = pneg %p732_p3 }
  0x33   : > { %p738_p0 = pnand %p737_p13, %p733_p7 }
  0x35   : > { %330 = vmatpush.bf16.msra.mxu0 %v530_v3 }
  0x39   : > { %331 = vmatpush.bf16.msra.mxu0 %v529_v4 }
  0x3d   : > { %332 = vmatpush.bf16.msra.mxu0 %v528_v5 }
  0x41   : > { %333 = vmatpush.bf16.msra.mxu0 %v527_v6 }
  0x45   : > { %334 = vmatpush.bf16.msra.mxu0 %v526_v7 }
  0x48   : > { %335 = vmatmul.bf16.vlgmr.msra.gmra.mxu0 %v525_v8 }
  0xc5   : > { %v336_v10 = vpop.f32.mrf.mxu0 }
  0xc6   : > { %v337_v11 = vadd.f32 %v336_v10, %v271_v9 }
  0xc8   : > { %341 = vst [vmem:[%s249_s25] sm:$0xff] %v337_v11 }
  0xcd   : > { %v338_v13 = vpop.f32.mrf.mxu0 }
  0xce   : > { %v339_v14 = vadd.f32 %v338_v13, %v272_v12 }
  0xd0   : > { %342 = vst [vmem:[%s249_s25 + $0x8] sm:$0xff] %v339_v14 }
  0xd1   : > { %741 = shalt.err (!%p738_p0)
}
  0xd2   : > { %s808_s19 = smov 128   ;;  %s809_s18 = smov 8  }
  0xd3   : > { %545 = dma.vmem_to_hbm [thread:$0]  (%p909_p2), %s359_s29, 256, %s361_s30, %s344_s4, %s808_s19, %s808_s19, %s809_s18  }
  0xd4 PF: > { %s375_s20 = sand.u32 1, %s780_s12   ;;  %p559_p4 = pnand %p474_p10, %p877_p5 }
  0xd5   : > { %s376_s21 = scalar_lea.sflag [#allocation4], %s375_s20 }
  0xd6   : > { %p560_p6 = pneg %p559_p4 }
  0xd8   : > { %775 = dma.done.wait (%p560_p6), %s376_s21, 256  }
  0xd9   : > { %777 = vsyncadd (%p560_p6), %s376_s21, 4294967040  ;;  %s20_s17 = sadd.s32 1, %s800_s17   ;;  %s992_s12 = smov %s784_s13 }
  0xda   : > { %p17_p8 = scmp.ge.s32.totalorder %s20_s17, 4   ;;  %s993_s13 = smov %s788_s14 }
  0xdb   : > { %s994_s14 = smov %s919_s28  ;;  %s995_s15 = smov %s796_s16 }
  0xdc   : > { %s996_s16 = smov %s998_s11  ;;  %19 = sbr.rel (!%p17_p8) target bundleno = 7 (0x7), region = 86 }
  0xe1   :  { %382 = vsyncpa [#allocation3], 1 }
  0xe2   :  { %384 = vsyncpa [#allocation3 + $0x1], 1 }
  0xe3   :  { %385 = vsyncpa [#allocation6], 1 }
  0xe4   :  { %386 = vsyncpa [#allocation4], 1 }
  0xe5   :  { %388 = vsyncpa [#allocation4 + $0x1], 1 }

</bundles_post_ra>
